<compile_context>
chip_gen: v7x
topology: tpu7x:2x2x1
jax: 0.10.0
libtpu: 0.0.40
codegen_flags: <defaults>
</compile_context>

<pallas_src>
import functools

import jax
import jax.numpy as jnp
from jax.experimental import pallas as pl
from jax.experimental.pallas import tpu as pltpu


def _point2pixel_kernel(pts_ref, xo_ref, yo_ref, *, fx, fy, cx, cy):
    # pts_ref: (3, tb, tp) channels-first block; [0]=x, [1]=y, [2]=depth.
    x = pts_ref[0]
    y = pts_ref[1]
    d = pts_ref[2]
    # One exact divide (reciprocal) shared by both projections.
    inv_d = 1.0 / d
    zero = d == 0.0
    # depth==0 lanes (and any edge-padding lanes of a partial block) produce
    # inf/nan in the unmasked expression; they are discarded by jnp.where /
    # the clipped writeback, matching the PyTorch in-place masking. Do NOT
    # "fix" this with an extra guard -- it only adds cost.
    xo_ref[...] = jnp.where(zero, 0.0, x * inv_d * fx + cx)
    yo_ref[...] = jnp.where(zero, 0.0, y * inv_d * fy + cy)


def _pick_tile(dim, max_tile, align):
    """Full dim if it is small (always legal), else the largest multiple of `align`."""
    if dim <= max_tile:
        return dim
    return max(align, (max_tile // align) * align)


class Point2Pixel:
    DTYPE = jnp.float32

    # ~128K f32 elements per (tb, tp) plane -> 5 planes (3 in + 2 out)
    # * 2 pipeline buffers * 4 B  ~= 5 MiB of VMEM: comfortably inside the
    # default scoped limits of v5e (16 MiB) and v6e / v7x (32 MiB).
    _TARGET_BLOCK_ELEMS = 128 * 1024
    _MAX_TP = 2048  # lane-dense multiple of 128 -> unmasked vst stores

    def __init__(self, scale, width, height, cx, cy, fx, fy):
        self.scale = float(scale)
        self.width = int(width)
        self.height = int(height)
        self.fx = float(fx)
        self.fy = float(fy)
        self.cx = float(cx)
        self.cy = float(cy)

    def __call__(self, point_image):
        # point_image: [B, P, 3] float32
        assert point_image.ndim == 3 and point_image.shape[-1] == 3
        B, P, _ = point_image.shape

        # Single channels-first layout pass instead of three strided slices.
        # TODO(synk): if the upstream producer can emit (3, B, P) directly,
        # drop this transpose and save a full HBM read+write pass.
        pts = jnp.transpose(point_image.astype(self.DTYPE), (2, 0, 1))  # (3, B, P)

        tp = _pick_tile(P, self._MAX_TP, 128)
        tb_max = max(8, self._TARGET_BLOCK_ELEMS // max(tp, 1))
        tb = _pick_tile(B, tb_max, 8)

        grid = (pl.cdiv(B, tb), pl.cdiv(P, tp))
        in_spec = pl.BlockSpec((3, tb, tp), lambda i, j: (0, i, j))
        out_spec = pl.BlockSpec((tb, tp), lambda i, j: (i, j))

        kernel = functools.partial(
            _point2pixel_kernel, fx=self.fx, fy=self.fy, cx=self.cx, cy=self.cy
        )

        x_pix, y_pix = pl.pallas_call(
            kernel,
            grid=grid,
            in_specs=[in_spec],
            out_specs=(out_spec, out_spec),
            out_shape=(
                jax.ShapeDtypeStruct((B, P), self.DTYPE),
                jax.ShapeDtypeStruct((B, P), self.DTYPE),
            ),
            compiler_params=pltpu.CompilerParams(
                dimension_semantics=("parallel", "parallel")
            ),
        )(pts)
        return x_pix, y_pix


def _reference(point_image, fx, fy, cx, cy):
    x = point_image[:, :, 0]
    y = point_image[:, :, 1]
    d = point_image[:, :, 2]
    xp = x / d * fx + cx
    yp = y / d * fy + cy
    zero = d == 0.0
    return jnp.where(zero, 0.0, xp), jnp.where(zero, 0.0, yp)


if __name__ == "__main__":
    key = jax.random.PRNGKey(0)
    B, P = 8, 256  # small demo: 8 rows of 256 points (lane-dense, 2x128)
    k1, k2 = jax.random.split(key)
    pts = jax.random.normal(k1, (B, P, 3), dtype=jnp.float32)
    # make some depths exactly zero to exercise the depth==0 masking path
    zero_mask = jax.random.bernoulli(k2, 0.1, (B, P))
    depth = jnp.where(zero_mask, 0.0, pts[:, :, 2] + 3.0)
    pts = pts.at[:, :, 2].set(depth)

    model = Point2Pixel(scale=1000.0, width=640, height=480,
                        cx=320.5, cy=240.5, fx=525.0, fy=525.0)

    x_pix, y_pix = model(pts)
    jax.block_until_ready((x_pix, y_pix))

    x_ref, y_ref = _reference(pts, model.fx, model.fy, model.cx, model.cy)
    assert jnp.allclose(x_pix, x_ref, atol=1e-4, rtol=1e-5)
    assert jnp.allclose(y_pix, y_ref, atol=1e-4, rtol=1e-5)
    print("KERNEL_OK")
</pallas_src>

<mosaic_0001>
module attributes {stable_mosaic.version = 11 : i64} {
  func.func @_point2pixel_kernel(%arg0: i32, %arg1: i32, %arg2: memref<3x8x256xf32, #tpu.memory_space<vmem>>, %arg3: memref<8x256xf32, #tpu.memory_space<vmem>>, %arg4: memref<8x256xf32, #tpu.memory_space<vmem>>) attributes {dimension_semantics = [#tpu.dimension_semantics<parallel>, #tpu.dimension_semantics<parallel>], iteration_bounds = array<i64: 1, 1>, scalar_prefetch = 0 : i64, scratch_operands = 0 : i64, tpu.core_type = #tpu.core_type<tc>, window_params = [{transform_indices = @transform_0, window_bounds = array<i64: 3, 8, 256>}, {transform_indices = @transform_1, window_bounds = array<i64: 8, 256>}, {transform_indices = @transform_2, window_bounds = array<i64: 8, 256>}]} {
    %c0 = arith.constant 0 : index
    %c0_0 = arith.constant 0 : index
    %c0_1 = arith.constant 0 : index
    %0 = vector.load %arg2[%c0, %c0_0, %c0_1] : memref<3x8x256xf32, #tpu.memory_space<vmem>>, vector<1x8x256xf32>
    %1 = vector.shape_cast %0 : vector<1x8x256xf32> to vector<8x256xf32>
    %c1 = arith.constant 1 : index
    %c0_2 = arith.constant 0 : index
    %c0_3 = arith.constant 0 : index
    %2 = vector.load %arg2[%c1, %c0_2, %c0_3] : memref<3x8x256xf32, #tpu.memory_space<vmem>>, vector<1x8x256xf32>
    %3 = vector.shape_cast %2 : vector<1x8x256xf32> to vector<8x256xf32>
    %c2 = arith.constant 2 : index
    %c0_4 = arith.constant 0 : index
    %c0_5 = arith.constant 0 : index
    %4 = vector.load %arg2[%c2, %c0_4, %c0_5] : memref<3x8x256xf32, #tpu.memory_space<vmem>>, vector<1x8x256xf32>
    %5 = vector.shape_cast %4 : vector<1x8x256xf32> to vector<8x256xf32>
    %cst = arith.constant 1.000000e+00 : f32
    %6 = vector.broadcast %cst : f32 to vector<8x256xf32>
    %7 = arith.divf %6, %5 : vector<8x256xf32>
    %cst_6 = arith.constant 0.000000e+00 : f32
    %8 = vector.broadcast %cst_6 : f32 to vector<8x256xf32>
    %9 = arith.cmpf oeq, %5, %8 : vector<8x256xf32>
    %10 = arith.mulf %1, %7 : vector<8x256xf32>
    %cst_7 = arith.constant 5.250000e+02 : f32
    %11 = vector.broadcast %cst_7 : f32 to vector<8x256xf32>
    %12 = arith.mulf %10, %11 : vector<8x256xf32>
    %cst_8 = arith.constant 3.205000e+02 : f32
    %13 = vector.broadcast %cst_8 : f32 to vector<8x256xf32>
    %14 = arith.addf %12, %13 : vector<8x256xf32>
    %cst_9 = arith.constant 0.000000e+00 : f32
    %15 = vector.broadcast %cst_9 : f32 to vector<8x256xf32>
    %16 = arith.select %9, %15, %14 : vector<8x256xi1>, vector<8x256xf32>
    %c0_10 = arith.constant 0 : index
    %c0_11 = arith.constant 0 : index
    %17 = vector.load %arg3[%c0_10, %c0_11] : memref<8x256xf32, #tpu.memory_space<vmem>>, vector<8x256xf32>
    tpu.vector_store %arg3[%c0_10, %c0_11], %16 {strides = array<i32>} : memref<8x256xf32, #tpu.memory_space<vmem>>, vector<8x256xf32>,
    %18 = arith.mulf %3, %7 : vector<8x256xf32>
    %cst_12 = arith.constant 5.250000e+02 : f32
    %19 = vector.broadcast %cst_12 : f32 to vector<8x256xf32>
    %20 = arith.mulf %18, %19 : vector<8x256xf32>
    %cst_13 = arith.constant 2.405000e+02 : f32
    %21 = vector.broadcast %cst_13 : f32 to vector<8x256xf32>
    %22 = arith.addf %20, %21 : vector<8x256xf32>
    %cst_14 = arith.constant 0.000000e+00 : f32
    %23 = vector.broadcast %cst_14 : f32 to vector<8x256xf32>
    %24 = arith.select %9, %23, %22 : vector<8x256xi1>, vector<8x256xf32>
    %c0_15 = arith.constant 0 : index
    %c0_16 = arith.constant 0 : index
    %25 = vector.load %arg4[%c0_15, %c0_16] : memref<8x256xf32, #tpu.memory_space<vmem>>, vector<8x256xf32>
    tpu.vector_store %arg4[%c0_15, %c0_16], %24 {strides = array<i32>} : memref<8x256xf32, #tpu.memory_space<vmem>>, vector<8x256xf32>,
    return
  }
  func.func @transform_0(%arg0: i32, %arg1: i32) -> (i32, i32, i32) {
    %c0_i32 = arith.constant 0 : i32
    %c0_i32_0 = arith.constant 0 : i32
    return %c0_i32, %arg0, %arg1 : i32, i32, i32
  }
  func.func @transform_1(%arg0: i32, %arg1: i32) -> (i32, i32) {
    %c0_i32 = arith.constant 0 : i32
    return %arg0, %arg1 : i32, i32
  }
  func.func @transform_2(%arg0: i32, %arg1: i32) -> (i32, i32) {
    %c0_i32 = arith.constant 0 : i32
    return %arg0, %arg1 : i32, i32
  }
}

</mosaic_0001>

<bundles_post_ra>
// kernel: tpu_custom_call.1
= control target key start
LH: loop header
LB: loop body
LE: loop exit
PB: predicated region body
PF: predicated region fallthrough
CT: control target
= control target key end

     0   :  { %8 = vsyncpa [#allocation3], 0  ;;  %s226_s0 = inlined_call_operand.hbm [shape: f32[3,8,256], index: 0, kind: input, shape index: {}]   ;;  %s227_s1 = inlined_call_operand.hbm [shape: f32[8,256], index: 1, kind: output, shape index: {0}]   ;;  %s228_s2 = inlined_call_operand.hbm [shape: f32[8,256], index: 2, kind: output, shape index: {1}]  }
   0x1   :  { %9 = vsyncpa [#allocation4], 0 }
   0x2   :  { %10 = vsyncpa [#allocation7], 0  ;;  %s170_s9 = smov [#allocation2]   ;;  %s98_s13 = scalar_lea.hbm %s226_s0, 768 }
   0x3   :  { %s16_s10 = sshll.u32 %s170_s9, 4  ;;  %p99_p0 = scmp.ne.s32.totalorder %s226_s0, %s98_s13  ;;  %s17_s10 = int_to_ptr.vmem [resolvable:$true] %s16_s10 }
   0x4   :  { %p102_p1 = scmp.lt.u32.totalorder %s98_s13, %s226_s0 }
   0x6   :  { %p104_p2 = pnand %p102_p1, %p99_p0 }
   0x8   :  { %107 = shalt.err (!%p104_p2)
}
   0x9   :  { %s108_s18 = scalar_lea.vmem %s17_s10, 768  ;;  %p113_p4 = scmp.lt.s32.totalorder %s17_s10, %s17_s10 }
   0xa   :  { %p109_p3 = scmp.ne.s32.totalorder %s17_s10, %s108_s18  ;;  %p114_p5 = scmp.lt.s32.totalorder %s108_s18, %s108_s18 }
   0xc   :  { %p115_p6 = por %p114_p5, %p113_p4 }
   0xe   :  { %p116_p7 = pnand %p115_p6, %p109_p3 }
  0x10   :  { %119 = shalt.err (!%p116_p7)
}
  0x11   :  { %s171_s19 = smov 256   ;;  %s172_s20 = smov 16  }
  0x12   :  { %22 = dma.hbm_to_vmem [thread:$0]  %s226_s0, 768, %s17_s10, [#allocation3], %s171_s19, %s171_s19, %s172_s20  }
  0x13   :  { %164 = dma.done.wait [#allocation3], 768  }
  0x14   :  { %165 = vsyncadd [#allocation3], 4294966528  ;;  %v32_v0 = vld [vmem:[#allocation2 + $0x20] sm:$0xff]  ;;  %v33_v1 = vld [vmem:[#allocation2 + $0x28] sm:$0xff]  ;;  %s173_s0 = smov [#allocation5]   ;;  %s174_s24 = smov [#allocation6]  }
  0x15   :  { %94 = vrcp.f32 %v32_v0  ;;  %v26_v2 = vld [vmem:[#allocation2] sm:$0xff]  ;;  %v29_v3 = vld [vmem:[#allocation2 + $0x10] sm:$0xff]  ;;  %v27_v4 = vld [vmem:[#allocation2 + $0x8] sm:$0xff]  ;;  %vm38_vm0 = vcmp.eq.f32.partialorder %v32_v0, 0.0  ;;  %s66_s23 = sshll.u32 %s173_s0, 4  ;;  %vm39_vm1 = vcmp.eq.f32.partialorder %v33_v1, 0.0  ;;  %s67_s23 = int_to_ptr.vmem [resolvable:$true] %s66_s23 }
  0x16   :  { %96 = vrcp.f32 %v33_v1  ;;  %v30_v5 = vld [vmem:[#allocation2 + $0x18] sm:$0xff]  ;;  %s76_s25 = sshll.u32 %s174_s24, 4  ;;  %s120_s26 = scalar_lea.vmem %s67_s23, 256  ;;  %s77_s25 = int_to_ptr.vmem [resolvable:$true] %s76_s25 }
  0x17   :  { %p121_p8 = scmp.ne.s32.totalorder %s67_s23, %s120_s26  ;;  %p125_p9 = scmp.lt.s32.totalorder %s67_s23, %s67_s23 }
  0x18   :  { %p126_p10 = scmp.lt.s32.totalorder %s120_s26, %s120_s26 }
  0x1a   :  { %p127_p11 = por %p126_p10, %p125_p9 }
  0x1c   :  { %p128_p12 = pnand %p127_p11, %p121_p8 }
  0x1f   :  { %v95_v6 = vpop.eup %94 }
  0x20   :  { %v97_v7 = vpop.eup %96  ;;  %v40_v8 = vmul.f32 %v95_v6, %v26_v2  ;;  %v50_v9 = vmul.f32 %v95_v6, %v29_v3 }
  0x21   :  { %v41_v10 = vmul.f32 %v97_v7, %v27_v4  ;;  %v51_v11 = vmul.f32 %v97_v7, %v30_v5 }
  0x22   :  { %v42_v12 = vmul.f32 525.0, %v40_v8  ;;  %v52_v13 = vmul.f32 525.0, %v50_v9 }
  0x23   :  { %v43_v14 = vmul.f32 525.0, %v41_v10  ;;  %v53_v15 = vmul.f32 525.0, %v51_v11 }
  0x24   :  { %v44_v16 = vadd.f32 320.5, %v42_v12  ;;  %v54_v17 = vadd.f32 240.5, %v52_v13 }
  0x25   :  { %v45_v18 = vadd.f32 320.5, %v43_v14  ;;  %v55_v19 = vadd.f32 240.5, %v53_v15 }
  0x26   :  { %v46_v20 = vsel %vm38_vm0, 0.0, %v44_v16  ;;  %v56_v21 = vsel %vm38_vm0, 0.0, %v54_v17 }
  0x27   :  { %48 = vst [vmem:[#allocation5] sm:$0xff] %v46_v20  ;;  %v47_v22 = vsel %vm39_vm1, 0.0, %v45_v18  ;;  %58 = vst [vmem:[#allocation6] sm:$0xff] %v56_v21  ;;  %v57_v23 = vsel %vm39_vm1, 0.0, %v55_v19 }
  0x28   :  { %49 = vst [vmem:[#allocation5 + $0x8] sm:$0xff] %v47_v22  ;;  %59 = vst [vmem:[#allocation6 + $0x8] sm:$0xff] %v57_v23 }
  0x29   :  { %131 = shalt.err (!%p128_p12)
}
  0x2a   :  { %s132_s29 = scalar_lea.hbm %s227_s1, 256 }
  0x2b   :  { %p133_p13 = scmp.ne.s32.totalorder %s227_s1, %s132_s29  ;;  %p136_p0 = scmp.lt.u32.totalorder %s132_s29, %s227_s1 }
  0x2d   :  { %p138_p1 = pnand %p136_p0, %p133_p13 }
  0x2f   :  { %141 = shalt.err (!%p138_p1)
}
  0x30   :  { %69 = dma.vmem_to_hbm [thread:$0]  %s67_s23, 256, %s227_s1, [#allocation4]  }
  0x31   :  { %s142_s8 = scalar_lea.vmem %s77_s25, 256  ;;  %p147_p3 = scmp.lt.s32.totalorder %s77_s25, %s77_s25 }
  0x32   :  { %p143_p2 = scmp.ne.s32.totalorder %s77_s25, %s142_s8  ;;  %p148_p4 = scmp.lt.s32.totalorder %s142_s8, %s142_s8 }
  0x34   :  { %p149_p5 = por %p148_p4, %p147_p3 }
  0x36   :  { %p150_p6 = pnand %p149_p5, %p143_p2 }
  0x38   :  { %153 = shalt.err (!%p150_p6)
}
  0x39   :  { %s154_s11 = scalar_lea.hbm %s228_s2, 256 }
  0x3a   :  { %p155_p7 = scmp.ne.s32.totalorder %s228_s2, %s154_s11  ;;  %p158_p8 = scmp.lt.u32.totalorder %s154_s11, %s228_s2 }
  0x3c   :  { %p160_p9 = pnand %p158_p8, %p155_p7 }
  0x3e   :  { %163 = shalt.err (!%p160_p9)
}
  0x3f   :  { %79 = dma.vmem_to_hbm [thread:$0]  %s77_s25, 256, %s228_s2, [#allocation7]  }
  0x40   :  { %166 = dma.done.wait [#allocation4], 256  }
  0x41   :  { %167 = vsyncadd [#allocation4], 4294967040 }
  0x42   :  { %168 = dma.done.wait [#allocation7], 256  }
  0x43   :  { %169 = vsyncadd [#allocation7], 4294967040 }
  0x44   :  { %86 = vsyncpa [#allocation3], 1 }
  0x45   :  { %87 = vsyncpa [#allocation4], 1 }
  0x46   :  { %88 = vsyncpa [#allocation7], 1 }

</bundles_post_ra>
